<compile_context>
chip_gen: v5e
topology: v5e:2x2
jax: 0.10.0
libtpu: 0.0.40
codegen_flags: <defaults>
</compile_context>

<pallas_src>
import jax
import jax.numpy as jnp
from jax.experimental import pallas as pl
from jax.experimental.pallas import tpu as pltpu


def _round_up(x: int, m: int) -> int:
    return ((x + m - 1) // m) * m


def _mixing_kernel(mask_ref, deltas_ref, alphas_ref, dens_ref, out_ref, acc_ref):
    # mask/deltas/alphas/dens_ref: [TR, TS] f32 tiles
    # out_ref:                     [TR, 1]
    # acc_ref (VMEM scratch):      [TR, 128] f32, persists across sample chunks
    k = pl.program_id(1)

    @pl.when(k == 0)
    def _init():
        acc_ref[...] = jnp.zeros_like(acc_ref)

    prod = mask_ref[...] * deltas_ref[...] * alphas_ref[...] * dens_ref[...]

    # Per-step accumulation uses only VALU adds over aligned 128-lane column
    # groups (zero-cost vreg selection); the cross-lane (XLU) reduce is
    # deferred to the once-per-ray-tile epilogue.
    ts = prod.shape[-1]
    partial = prod[:, 0:128]
    for j in range(1, ts // 128):
        partial = partial + prod[:, j * 128:(j + 1) * 128]
    acc_ref[...] += partial

    @pl.when(k == pl.num_programs(1) - 1)
    def _store():
        out_ref[...] = jnp.sum(acc_ref[...], axis=-1, keepdims=True).astype(out_ref.dtype)


def spatiotemporal_mixing_render(alphas, positions, deltas, densities,
                                 *, tile_rays=512, tile_samples=2048):
    """alphas/deltas/densities: [R, S, 1] f32; positions: [R, S, 3] f32 -> [R, 1] f32."""
    R, S, _ = alphas.shape

    # Precompute the in-box mask as a single [R, S] f32 plane.  This fuses into
    # one XLA pass over positions (no materialized transpose) and replaces the
    # three position planes at the kernel boundary.
    mask = jnp.all(jnp.abs(positions) <= 1.0, axis=-1).astype(jnp.float32)
    a = alphas[..., 0]      # free reshape (no HBM pass)
    d = deltas[..., 0]
    rho = densities[..., 0]

    # ---- tile sizing ------------------------------------------------------
    tr = min(_round_up(tile_rays, 8), _round_up(R, 8))          # sublane axis /8
    # Keep at least 2 ray tiles when possible so both v7x TensorCores get work.
    if R >= 16:
        tr = min(tr, _round_up((R + 1) // 2, 8))
    ts = min(_round_up(tile_samples, 128), _round_up(S, 128))   # lane axis /128

    # VMEM budget: query actual capacity, spend at most ~75% of it.
    try:
        vmem_cap = int(pltpu.get_tpu_info().vmem_capacity_bytes)
    except Exception:
        vmem_cap = 64 * 1024 * 1024   # v7x per-TC capacity (smallest generation)
    vmem_budget = int(0.75 * vmem_cap)

    def _footprint(tr_, ts_):
        # 4 input planes double-buffered + output block + (tr,128) accumulator
        return 2 * 4 * tr_ * ts_ * 4 + 3 * tr_ * 128 * 4

    # Shrink the sample tile (then the ray tile) until the footprint fits,
    # instead of silently clamping the VMEM limit below what we request.
    while _footprint(tr, ts) > vmem_budget and ts > 128:
        ts = max(128, _round_up(ts // 2, 128))
    while _footprint(tr, ts) > vmem_budget and tr > 8:
        tr = max(8, _round_up(tr // 2, 8))

    R_pad = _round_up(R, tr)
    S_pad = _round_up(S, ts)

    # Zero-pad if needed: padded samples contribute 0 (mask/deltas are 0
    # there), padded rays are sliced off at the end.
    if R_pad != R or S_pad != S:
        pad_rs = ((0, R_pad - R), (0, S_pad - S))
        mask = jnp.pad(mask, pad_rs)
        a = jnp.pad(a, pad_rs)
        d = jnp.pad(d, pad_rs)
        rho = jnp.pad(rho, pad_rs)

    grid = (R_pad // tr, S_pad // ts)

    rs_spec = pl.BlockSpec((tr, ts), lambda i, k: (i, k))
    out_spec = pl.BlockSpec((tr, 1), lambda i, k: (i, 0))

    vmem_limit = min(int(_footprint(tr, ts) * 1.25) + (1 << 20), vmem_budget)

    cost = pl.CostEstimate(
        flops=5 * R_pad * S_pad,
        transcendentals=0,
        bytes_accessed=4 * R_pad * S_pad * 4 + R_pad * 4,
    )

    acc = pl.pallas_call(
        _mixing_kernel,
        out_shape=jax.ShapeDtypeStruct((R_pad, 1), jnp.float32),
        grid_spec=pltpu.PrefetchScalarGridSpec(
            num_scalar_prefetch=0,
            grid=grid,
            in_specs=[rs_spec, rs_spec, rs_spec, rs_spec],
            out_specs=out_spec,
            scratch_shapes=[pltpu.VMEM((tr, 128), jnp.float32)],
        ),
        compiler_params=pltpu.CompilerParams(
            dimension_semantics=("parallel", "arbitrary"),
            vmem_limit_bytes=vmem_limit,
        ),
        cost_estimate=cost,
    )(mask, d, a, rho)

    return acc[:R]  # [R, 1]


def _reference(alphas, positions, deltas, densities):
    mask = jnp.all((positions >= -1) & (positions <= 1), axis=-1, keepdims=True)
    delta_alpha = deltas * alphas * mask.astype(alphas.dtype)
    delta_alpha = delta_alpha * densities
    return jnp.sum(delta_alpha, axis=-2)


def _make_inputs(key, R, S):
    k1, k2, k3, k4 = jax.random.split(key, 4)
    # positions spread in [-1.5, 1.5] so some samples fall outside the unit box
    positions = jax.random.uniform(k1, (R, S, 3), jnp.float32, minval=-1.5, maxval=1.5)
    deltas = jax.random.uniform(k2, (R, S, 1), jnp.float32, minval=0.0, maxval=0.1)
    alphas = jax.random.uniform(k3, (R, S, 1), jnp.float32, minval=0.0, maxval=1.0)
    densities = jax.random.uniform(k4, (R, S, 1), jnp.float32, minval=0.0, maxval=2.0)
    return alphas, positions, deltas, densities


if __name__ == "__main__":
    key = jax.random.PRNGKey(0)
    ka, kb = jax.random.split(key)

    # Case 1: ragged shapes with small explicit tiles -> exercises padding,
    # the 2-D grid (4 ray tiles x 3 sample chunks) and the accumulator path.
    alphas, positions, deltas, densities = _make_inputs(ka, 200, 300)
    out = spatiotemporal_mixing_render(alphas, positions, deltas, densities,
                                       tile_rays=64, tile_samples=128)
    out = jax.block_until_ready(out)
    ref = _reference(alphas, positions, deltas, densities)
    assert out.shape == (200, 1)
    assert jnp.allclose(out, ref, atol=1e-5, rtol=1e-5), "mismatch vs reference (case 1)"

    # Case 2: aligned shapes with default (large) tiles -> exercises the tile
    # clamps (incl. the >=2 ray-tile megacore clamp) and the single-chunk path.
    alphas, positions, deltas, densities = _make_inputs(kb, 256, 128)
    out = spatiotemporal_mixing_render(alphas, positions, deltas, densities)
    out = jax.block_until_ready(out)
    ref = _reference(alphas, positions, deltas, densities)
    assert out.shape == (256, 1)
    assert jnp.allclose(out, ref, atol=1e-5, rtol=1e-5), "mismatch vs reference (case 2)"

    print("KERNEL_OK")
</pallas_src>

<mosaic_0001>
module attributes {stable_mosaic.version = 11 : i64} {
  func.func @_mixing_kernel(%arg0: i32, %arg1: i32, %arg2: memref<64x128xf32, #tpu.memory_space<vmem>>, %arg3: memref<64x128xf32, #tpu.memory_space<vmem>>, %arg4: memref<64x128xf32, #tpu.memory_space<vmem>>, %arg5: memref<64x128xf32, #tpu.memory_space<vmem>>, %arg6: memref<64x1xf32, #tpu.memory_space<vmem>>, %arg7: memref<64x128xf32, #tpu.memory_space<vmem>>) attributes {dimension_semantics = [#tpu.dimension_semantics<parallel>, #tpu.dimension_semantics<arbitrary>], iteration_bounds = array<i64: 4, 3>, scalar_prefetch = 0 : i64, scratch_operands = 1 : i64, tpu.core_type = #tpu.core_type<tc>, window_params = [{transform_indices = @transform_0, window_bounds = array<i64: 64, 128>}, {transform_indices = @transform_1, window_bounds = array<i64: 64, 128>}, {transform_indices = @transform_2, window_bounds = array<i64: 64, 128>}, {transform_indices = @transform_3, window_bounds = array<i64: 64, 128>}, {transform_indices = @transform_4, window_bounds = array<i64: 64, 1>}]} {
    %c0_i32 = arith.constant 0 : i32
    %0 = arith.cmpi eq, %arg1, %c0_i32 : i32
    %1 = arith.extui %0 : i1 to i32
    %c0_i32_0 = arith.constant 0 : i32
    %2 = arith.cmpi ne, %1, %c0_i32_0 : i32
    scf.if %2 {
      %cst = arith.constant 0.000000e+00 : f32
      %16 = vector.broadcast %cst : f32 to vector<64x128xf32>
      %c0_13 = arith.constant 0 : index
      %c0_14 = arith.constant 0 : index
      %17 = vector.load %arg7[%c0_13, %c0_14] : memref<64x128xf32, #tpu.memory_space<vmem>>, vector<64x128xf32>
      tpu.vector_store %arg7[%c0_13, %c0_14], %16 {strides = array<i32>} : memref<64x128xf32, #tpu.memory_space<vmem>>, vector<64x128xf32>,
    } else {
    }
    %c0 = arith.constant 0 : index
    %c0_1 = arith.constant 0 : index
    %3 = vector.load %arg2[%c0, %c0_1] : memref<64x128xf32, #tpu.memory_space<vmem>>, vector<64x128xf32>
    %c0_2 = arith.constant 0 : index
    %c0_3 = arith.constant 0 : index
    %4 = vector.load %arg3[%c0_2, %c0_3] : memref<64x128xf32, #tpu.memory_space<vmem>>, vector<64x128xf32>
    %5 = arith.mulf %3, %4 : vector<64x128xf32>
    %c0_4 = arith.constant 0 : index
    %c0_5 = arith.constant 0 : index
    %6 = vector.load %arg4[%c0_4, %c0_5] : memref<64x128xf32, #tpu.memory_space<vmem>>, vector<64x128xf32>
    %7 = arith.mulf %5, %6 : vector<64x128xf32>
    %c0_6 = arith.constant 0 : index
    %c0_7 = arith.constant 0 : index
    %8 = vector.load %arg5[%c0_6, %c0_7] : memref<64x128xf32, #tpu.memory_space<vmem>>, vector<64x128xf32>
    %9 = arith.mulf %7, %8 : vector<64x128xf32>
    %c0_8 = arith.constant 0 : index
    %c0_9 = arith.constant 0 : index
    %10 = vector.load %arg7[%c0_8, %c0_9] : memref<64x128xf32, #tpu.memory_space<vmem>>, vector<64x128xf32>
    %11 = arith.addf %10, %9 : vector<64x128xf32>
    %c0_10 = arith.constant 0 : index
    %c0_11 = arith.constant 0 : index
    %12 = vector.load %arg7[%c0_10, %c0_11] : memref<64x128xf32, #tpu.memory_space<vmem>>, vector<64x128xf32>
    tpu.vector_store %arg7[%c0_10, %c0_11], %11 {strides = array<i32>} : memref<64x128xf32, #tpu.memory_space<vmem>>, vector<64x128xf32>,
    %c2_i32 = arith.constant 2 : i32
    %13 = arith.cmpi eq, %arg1, %c2_i32 : i32
    %14 = arith.extui %13 : i1 to i32
    %c0_i32_12 = arith.constant 0 : i32
    %15 = arith.cmpi ne, %14, %c0_i32_12 : i32
    scf.if %15 {
      %c0_13 = arith.constant 0 : index
      %c0_14 = arith.constant 0 : index
      %16 = vector.load %arg7[%c0_13, %c0_14] : memref<64x128xf32, #tpu.memory_space<vmem>>, vector<64x128xf32>
      %cst = arith.constant dense<0.000000e+00> : vector<64xf32>
      %17 = vector.multi_reduction <add>, %16, %cst [1] : vector<64x128xf32> to vector<64xf32>
      %18 = vector.shape_cast %17 : vector<64xf32> to vector<64x1xf32>
      %c0_15 = arith.constant 0 : index
      %c0_16 = arith.constant 0 : index
      %19 = vector.load %arg6[%c0_15, %c0_16] : memref<64x1xf32, #tpu.memory_space<vmem>>, vector<64x1xf32>
      tpu.vector_store %arg6[%c0_15, %c0_16], %18 {strides = array<i32>} : memref<64x1xf32, #tpu.memory_space<vmem>>, vector<64x1xf32>,
    } else {
    }
    return
  }
  func.func @transform_0(%arg0: i32, %arg1: i32) -> (i32, i32) {
    %c0_i32 = arith.constant 0 : i32
    return %arg0, %arg1 : i32, i32
  }
  func.func @transform_1(%arg0: i32, %arg1: i32) -> (i32, i32) {
    %c0_i32 = arith.constant 0 : i32
    return %arg0, %arg1 : i32, i32
  }
  func.func @transform_2(%arg0: i32, %arg1: i32) -> (i32, i32) {
    %c0_i32 = arith.constant 0 : i32
    return %arg0, %arg1 : i32, i32
  }
  func.func @transform_3(%arg0: i32, %arg1: i32) -> (i32, i32) {
    %c0_i32 = arith.constant 0 : i32
    return %arg0, %arg1 : i32, i32
  }
  func.func @transform_4(%arg0: i32, %arg1: i32) -> (i32, i32) {
    %c0_i32 = arith.constant 0 : i32
    %c0_i32_0 = arith.constant 0 : i32
    return %arg0, %c0_i32 : i32, i32
  }
}

</mosaic_0001>

<bundles_post_ra>
// kernel: tpu_custom_call.1
= control target key start
LH: loop header
LB: loop body
LE: loop exit
PB: predicated region body
PF: predicated region fallthrough
CT: control target
= control target key end

     0   :  { %s1241_s0 = inlined_call_operand.hbm [shape: f32[256,384], index: 0, kind: input, shape index: {}]   ;;  %s1242_s1 = inlined_call_operand.hbm [shape: f32[256,384], index: 1, kind: input, shape index: {}]   ;;  %s1243_s2 = inlined_call_operand.hbm [shape: f32[256,384], index: 2, kind: input, shape index: {}]   ;;  %s1244_s3 = inlined_call_operand.hbm [shape: f32[256,384], index: 3, kind: input, shape index: {}]   ;;  %s1245_s4 = inlined_call_operand.vmem [shape: f32[256,1], index: 4, kind: output, shape index: {}]  }
   0x1   :  { %1251 = sst [smem:[#allocation18_spill]] %s1241_s0 }
   0x2   :  { %1252 = sst [smem:[#allocation19_spill]] %s1242_s1 }
   0x3   :  { %9 = vsyncpa [#allocation4], 0 }
   0x4   :  { %11 = vsyncpa [#allocation4 + $0x1], 0 }
   0x5   :  { %12 = vsyncpa [#allocation6], 0 }
   0x6   :  { %14 = vsyncpa [#allocation6 + $0x1], 0 }
   0x7   :  { %15 = vsyncpa [#allocation9], 0 }
   0x8   :  { %17 = vsyncpa [#allocation9 + $0x1], 0  ;;  %s1008_s15 = smov 0   ;;  %s1010_s16 = smov 0  }
   0x9   :  { %s1012_s17 = smov 0   ;;  %s1014_s18 = smov 0  }
   0xa   :  { %s1016_s19 = smov 0   ;;  %s1018_s20 = smov 0  }
   0xb   :  { %s1020_s21 = smov 0   ;;  %s1022_s22 = smov 0  }
   0xc LB: > { %1253 = sst [smem:[#allocation13_spill]] %s969_s20  ;;  %s1246_s23 = sadd.s32 4294967295, %s977_s22   ;;  %s977_s22 = sphi %s1022_s22, %s23_s22   ;;  %s973_s21 = sphi %s1020_s21, %s1268_s21   ;;  %s969_s20 = sphi %s1018_s20, %s1267_s20   ;;  %s965_s19 = sphi %s1016_s19, %s1273_s19   ;;  %s961_s18 = sphi %s1014_s18, %s1272_s18   ;;  %s957_s17 = sphi %s1012_s17, %s1271_s17   ;;  %s953_s16 = sphi %s1010_s16, %s1270_s16   ;;  %s949_s15 = sphi %s1008_s15, %s1269_s15  }
   0xd   : > { %1254 = sst [smem:[#allocation14_spill]] %s973_s21  ;;  %s32_s24 = sadd.s32 1, %s969_s20 }
   0xe   : > { %p33_p0 = scmp.ge.s32.totalorder %s32_s24, 3  ;;  %s35_s25 = sadd.s32 1, %s973_s21 }
   0xf   : > { %s44_s26 = sadd.s32 1, %s957_s17  ;;  %p51_p1 = scmp.ne.s32.totalorder %s957_s17, %s953_s16 }
  0x10   : > { %s1275_s24 = smov (%p33_p0, %s32_s24), 0  ;;  %s1277_s25 = smov (!%p33_p0, %s35_s25), %s973_s21 }
  0x11   : > { %1255 = sst [smem:[#allocation15_spill]] %s1275_s24  ;;  %s40_s27 = ssub.s32 %s969_s20, %s1275_s24 }
  0x12   : > { %p52_p2 = scmp.eq.s32.totalorder %s977_s22, 0  ;;  %p37_p3 = scmp.ge.s32.totalorder %s1277_s25, 4 }
  0x13   : > { %p57_p4 = scmp.ne.s32.totalorder %s953_s16, %s949_s15  ;;  %p58_p6 = scmp.eq.s32.totalorder %s1246_s23, 0 }
  0x14   : > { %p53_p5 = por %p52_p2, %p51_p1  ;;  %s1279_s25 = smov (%p37_p3, %s1277_s25), 0 }
  0x15   : > { %1256 = sst [smem:[#allocation16_spill]] %s1279_s25  ;;  %p1063_p7 = por %p58_p6, %p57_p4 }
  0x16   : > { %s39_s29 = ssub.s32 %s973_s21, %s1279_s25  ;;  %p714_p8 = scmp.lt.s32.totalorder %s977_s22, 12 }
  0x17   : > { %s41_s30 = sor.u32 %s40_s27, %s39_s29  ;;  %s1071_s5 = sand.u32 1, %s957_s17  }
  0x18   : > { %p42_p9 = scmp.eq.s32.totalorder %s41_s30, 0  ;;  %s1074_s6 = sshll.u32 %s1071_s5, 6 }
  0x19   : > { %s689_s7 = smul.u32 24, %s973_s21  ;;  %p1077_p10 = pnand %p714_p8, %p53_p5 }
  0x1a   : > { %s1082_s9 = scalar_select %p42_p9, %s957_s17, %s44_s26  }
  0x1b   : > { %s200_s10 = sadd.s32 %s969_s20, %s689_s7  ;;  %s215_s12 = sand.u32 1, %s977_s22  }
  0x1c   : > { %1259 = sst [smem:[#allocation17_spill]] %s1082_s9  ;;  %s1085_s11 = sshll.u32 %s200_s10, 3 }
  0x1d   : > { %s1260_s1 = sld [smem:[#allocation19_spill]]  ;;  %s219_s29 = scalar_lea.vmem [#allocation5], %s1074_s6 }
  0x1e   : > { %s229_s30 = sshll.u32 %s219_s29, 4  ;;  %s216_s26 = scalar_lea.sflag [#allocation6], %s215_s12  ;;  %s230_s30 = int_to_ptr.vmem [resolvable:$true] %s229_s30 }
  0x1f   : > { %s979_s7 = smov 384   ;;  %s980_s10 = smov 128  }
  0x20   : > { %s981_s23 = smov 8   ;;  %p678_p11 = scmp.ge.s32.totalorder %s977_s22, 1 }
  0x21   : > { %p285_p12 = scmp.lt.s32.totalorder %s977_s22, 13  ;;  %s1262_s0 = sld [smem:[#allocation18_spill]] }
  0x22   : > { %s250_s14 = scalar_lea.hbm %s1243_s2, %s1085_s11  ;;  %s274_s20 = scalar_lea.hbm %s1244_s3, %s1085_s11 }
  0x23   : > { %s226_s15 = scalar_lea.hbm %s1260_s1, %s1085_s11  ;;  %p1100_p13 = pnand %p678_p11, %p285_p12 }
  0x24   : > { %s227_s27 = sshll.u32 %s226_s15, 4  ;;  %s195_s1 = scalar_lea.vmem [#allocation3], %s1074_s6  ;;  %s228_s27 = int_to_ptr.hbm [resolvable:$true] %s227_s27 }
  0x25   : > { %707 = dma.hbm_to_vmem [thread:$0]  (!%p1077_p10), %s228_s27, 1024, %s230_s30, %s216_s26, %s979_s7, %s980_s10, %s981_s23  }
  0x26   : > { %s205_s25 = sshll.u32 %s195_s1, 4  ;;  %s192_s27 = scalar_lea.sflag [#allocation4], %s1071_s5  ;;  %s206_s25 = int_to_ptr.vmem [resolvable:$true] %s205_s25 }
  0x27   : > { %s202_s12 = scalar_lea.hbm %s1262_s0, %s1085_s11  ;;  %s251_s15 = sshll.u32 %s250_s14, 4  ;;  %s252_s15 = int_to_ptr.hbm [resolvable:$true] %s251_s15 }
  0x28   : > { %s203_s29 = sshll.u32 %s202_s12, 4  ;;  %s243_s0 = scalar_lea.vmem [#allocation7], %s1074_s6  ;;  %s204_s29 = int_to_ptr.hbm [resolvable:$true] %s203_s29 }
  0x29   : > { %704 = dma.hbm_to_vmem [thread:$0]  (!%p1077_p10), %s204_s29, 1024, %s206_s25, %s192_s27, %s979_s7, %s980_s10, %s981_s23  }
  0x2a   : > { %s253_s21 = sshll.u32 %s243_s0, 4  ;;  %s267_s9 = scalar_lea.vmem [#allocation8], %s1074_s6  ;;  %s254_s21 = int_to_ptr.vmem [resolvable:$true] %s253_s21 }
  0x2b   : > { %710 = dma.hbm_to_vmem [thread:$0]  (!%p1077_p10), %s252_s15, 1024, %s254_s21, %s216_s26, %s979_s7, %s980_s10, %s981_s23  }
  0x2c   : > { %s277_s25 = sshll.u32 %s267_s9, 4  ;;  %s275_s29 = sshll.u32 %s274_s20, 4  ;;  %s278_s25 = int_to_ptr.vmem [resolvable:$true] %s277_s25  ;;  %s276_s29 = int_to_ptr.hbm [resolvable:$true] %s275_s29 }
  0x2d   : > { %s264_s24 = scalar_lea.sflag [#allocation9], %s1071_s5  ;;  %289 = sbr.rel (%p1100_p13) target bundleno = 230 (0xe6), region = 36 }
  0x2e   : > { %713 = dma.hbm_to_vmem [thread:$0]  (!%p1077_p10), %s276_s29, 1024, %s278_s25, %s264_s24, %s979_s7, %s980_s10, %s981_s23  }
  0x2f   : > { %s291_s0 = sand.u32 (!%p1100_p13), 1, %s953_s16  }
  0x30   : > { %s679_s21 = sshll.u32 (!%p1100_p13), %s291_s0, 6  ;;  %s292_s26 = scalar_lea.sflag (!%p1100_p13), [#allocation4], %s291_s0 }
  0x31   : > { %s1139_s11 = scalar_lea.vmem (!%p1100_p13), [#allocation3], %s679_s21 }
  0x32   : > { %936 = dma.done.wait (%p1063_p7), %s292_s26, 1024  }
  0x33   : > { %938 = vsyncadd (%p1063_p7), %s292_s26, 4294966272  ;;  %s1263_s20 = sadd.s32 4294967295, %s977_s22   ;;  %s1147_s6 = scalar_lea.vmem [#allocation5], %s679_s21 }
  0x34   : > { %s301_s5 = sand.u32 1, %s1263_s20  }
  0x35   : > { %s302_s23 = scalar_lea.sflag [#allocation6], %s301_s5 }
  0x36   : > { %940 = dma.done.wait (%p1063_p7), %s302_s23, 2048  }
  0x37   : > { %942 = vsyncadd (%p1063_p7), %s302_s23, 4294965248  ;;  %s1153_s8 = scalar_lea.vmem [#allocation7], %s679_s21  ;;  %s322_s9 = scalar_lea.sflag [#allocation9], %s291_s0 }
  0x38   : > { %s1155_s7 = scalar_lea.vmem [#allocation8], %s679_s21 }
  0x39   : > { %944 = dma.done.wait (%p1063_p7), %s322_s9, 1024  }
  0x3a   : > { %946 = vsyncadd (%p1063_p7), %s322_s9, 4294966272  ;;  %s683_s10 = sshll.u32 %s965_s19, 3  ;;  %p685_p1 = scmp.ne.s32.totalorder %s961_s18, 0 }
  0x3b   : > { %p371_p0 = scmp.lt.s32.totalorder %s683_s10, 31 }
  0x3c   : > { %379 = sbr.rel (%p685_p1) target bundleno = 74 (0x4a), region = 56 }
  0x3d   : > { %s1281_s10 = smov (!%p371_p0, %s683_s10), 31 }
  0x3e   : > { %s684_s13 = sshll.u32 %s1281_s10, 3 }
  0x3f   : > { %s1165_s14 = scalar_lea.vmem %s1245_s4, %s684_s13 }
  0x41   : > { %v982_v0 = vmov 0.0  }
  0x42   : > { %380 = vst [vmem:[#allocation2 + $0x30] sm:$0xff] %v982_v0 }
  0x43   : > { %381 = vst [vmem:[#allocation2] sm:$0xff] %v982_v0 }
  0x44   : > { %382 = vst [vmem:[#allocation2 + $0x18] sm:$0xff] %v982_v0 }
  0x45   : > { %383 = vst [vmem:[#allocation2 + $0x10] sm:$0xff] %v982_v0 }
  0x46   : > { %384 = vst [vmem:[#allocation2 + $0x8] sm:$0xff] %v982_v0 }
  0x47   : > { %385 = vst [vmem:[#allocation2 + $0x20] sm:$0xff] %v982_v0 }
  0x48   : > { %386 = vst [vmem:[#allocation2 + $0x28] sm:$0xff] %v982_v0 }
  0x49   : > { %387 = vst [vmem:[#allocation2 + $0x38] sm:$0xff] %v982_v0 }
  0x4a PF: > { %v388_v1 = vld [vmem:[%s1139_s11] sm:$0xff]  ;;  %v389_v5 = vld [vmem:[%s1139_s11 + $0x8] sm:$0xff]  ;;  %v444_v10 = vld [vmem:[#allocation2 + $0x30] sm:$0xff]  ;;  %p686_p2 = scmp.ne.s32.totalorder %s961_s18, 2 }
  0x4b   : > { %v396_v2 = vld [vmem:[%s1147_s6] sm:$0xff]  ;;  %v397_v7 = vld [vmem:[%s1147_s6 + $0x8] sm:$0xff]  ;;  %v390_v12 = vld [vmem:[%s1139_s11 + $0x10] sm:$0xff] }
  0x4c   : > { %v412_v3 = vld [vmem:[%s1153_s8] sm:$0xff]  ;;  %v404_v4 = vmul.f32 %v396_v2, %v388_v1  ;;  %v413_v8 = vld [vmem:[%s1153_s8 + $0x8] sm:$0xff]  ;;  %v405_v11 = vmul.f32 %v397_v7, %v389_v5  ;;  %v398_v13 = vld [vmem:[%s1147_s6 + $0x10] sm:$0xff] }
  0x4d   : > { %v428_v6 = vld [vmem:[%s1155_s7] sm:$0xff]  ;;  %v429_v14 = vld [vmem:[%s1155_s7 + $0x8] sm:$0xff]  ;;  %v406_v15 = vmul.f32 %v398_v13, %v390_v12  ;;  %v414_v16 = vld [vmem:[%s1153_s8 + $0x10] sm:$0xff] }
  0x4e   : > { %v420_v9 = vmul.f32 %v412_v3, %v404_v4  ;;  %v430_v17 = vld [vmem:[%s1155_s7 + $0x10] sm:$0xff]  ;;  %v421_v19 = vmul.f32 %v413_v8, %v405_v11  ;;  %v391_v20 = vld [vmem:[%s1139_s11 + $0x18] sm:$0xff]  ;;  %v445_v23 = vld [vmem:[#allocation2] sm:$0xff] }
  0x4f   : > { %v399_v21 = vld [vmem:[%s1147_s6 + $0x18] sm:$0xff]  ;;  %v422_v24 = vmul.f32 %v414_v16, %v406_v15  ;;  %v392_v27 = vld [vmem:[%s1139_s11 + $0x20] sm:$0xff]  ;;  %v447_v35 = vld [vmem:[#allocation2 + $0x10] sm:$0xff] }
  0x50   : > { %v436_v18 = vmul.f32 %v428_v6, %v420_v9  ;;  %v415_v22 = vld [vmem:[%s1153_s8 + $0x18] sm:$0xff]  ;;  %v407_v26 = vmul.f32 %v399_v21, %v391_v20  ;;  %v437_v29 = vmul.f32 %v429_v14, %v421_v19  ;;  %v400_v31 = vld [vmem:[%s1147_s6 + $0x20] sm:$0xff]  ;;  %v393_v37 = vld [vmem:[%s1139_s11 + $0x28] sm:$0xff] }
  0x51   : > { %v446_v25 = vld [vmem:[#allocation2 + $0x18] sm:$0xff]  ;;  %v416_v32 = vld [vmem:[%s1153_s8 + $0x20] sm:$0xff]  ;;  %v438_v33 = vmul.f32 %v430_v17, %v422_v24  ;;  %v408_v36 = vmul.f32 %v400_v31, %v392_v27  ;;  %v401_v38 = vld [vmem:[%s1147_s6 + $0x28] sm:$0xff] }
  0x52   : > { %v452_v28 = vadd.f32 %v444_v10, %v436_v18  ;;  %v431_v30 = vld [vmem:[%s1155_s7 + $0x18] sm:$0xff]  ;;  %v423_v34 = vmul.f32 %v415_v22, %v407_v26  ;;  %v453_v39 = vadd.f32 %v445_v23, %v437_v29  ;;  %v432_v40 = vld [vmem:[%s1155_s7 + $0x20] sm:$0xff]  ;;  %v409_v41 = vmul.f32 %v401_v38, %v393_v37  ;;  %v417_v42 = vld [vmem:[%s1153_s8 + $0x28] sm:$0xff] }
  0x53   : > { %v433_v43 = vld [vmem:[%s1155_s7 + $0x28] sm:$0xff]  ;;  %v454_v44 = vadd.f32 %v446_v25, %v438_v33  ;;  %v424_v46 = vmul.f32 %v416_v32, %v408_v36  ;;  %v394_v47 = vld [vmem:[%s1139_s11 + $0x30] sm:$0xff]  ;;  %v449_v52 = vld [vmem:[#allocation2 + $0x20] sm:$0xff] }
  0x54   : > { %460 = vst [vmem:[#allocation2 + $0x30] sm:$0xff] %v452_v28  ;;  %v439_v45 = vmul.f32 %v431_v30, %v423_v34  ;;  %v402_v48 = vld [vmem:[%s1147_s6 + $0x30] sm:$0xff]  ;;  %v448_v50 = vld [vmem:[#allocation2 + $0x8] sm:$0xff]  ;;  %v425_v51 = vmul.f32 %v417_v42, %v409_v41  ;;  %v395_v54 = vld [vmem:[%s1139_s11 + $0x38] sm:$0xff] }
  0x55   : > { %v418_v49 = vld [vmem:[%s1153_s8 + $0x30] sm:$0xff]  ;;  %461 = vst [vmem:[#allocation2] sm:$0xff] %v453_v39  ;;  %v410_v53 = vmul.f32 %v402_v48, %v394_v47  ;;  %v440_v56 = vmul.f32 %v432_v40, %v424_v46  ;;  %v403_v58 = vld [vmem:[%s1147_s6 + $0x38] sm:$0xff]  ;;  %v450_v0 = vld [vmem:[#allocation2 + $0x28] sm:$0xff] }
  0x56   : > { %462 = vst [vmem:[#allocation2 + $0x18] sm:$0xff] %v454_v44  ;;  %v455_v55 = vadd.f32 %v447_v35, %v439_v45  ;;  %v434_v57 = vld [vmem:[%s1155_s7 + $0x30] sm:$0xff]  ;;  %v419_v59 = vld [vmem:[%s1153_s8 + $0x38] sm:$0xff]  ;;  %v441_v60 = vmul.f32 %v433_v43, %v425_v51  ;;  %v411_v62 = vmul.f32 %v403_v58, %v395_v54 }
  0x57   : > { %v426_v61 = vmul.f32 %v418_v49, %v410_v53  ;;  %v456_v63 = vadd.f32 %v448_v50, %v440_v56  ;;  %v435_v1 = vld [vmem:[%s1155_s7 + $0x38] sm:$0xff] }
  0x58   : > { %463 = vst [vmem:[#allocation2 + $0x10] sm:$0xff] %v455_v55  ;;  %v457_v2 = vadd.f32 %v449_v52, %v441_v60  ;;  %v427_v4 = vmul.f32 %v419_v59, %v411_v62  ;;  %v451_v5 = vld [vmem:[#allocation2 + $0x38] sm:$0xff] }
  0x59   : > { %v442_v3 = vmul.f32 %v434_v57, %v426_v61  ;;  %464 = vst [vmem:[#allocation2 + $0x8] sm:$0xff] %v456_v63 }
  0x5a   : > { %465 = vst [vmem:[#allocation2 + $0x20] sm:$0xff] %v457_v2  ;;  %v443_v7 = vmul.f32 %v435_v1, %v427_v4  ;;  %471 = sbr.rel (%p686_p2) target bundleno = 230 (0xe6), region = 60 }
  0x5b   : > { %v458_v6 = vadd.f32 %v450_v0, %v442_v3 }
  0x5c   : > { %v459_v8 = vadd.f32 %v451_v5, %v443_v7 }
  0x5d   : > { %466 = vst [vmem:[#allocation2 + $0x28] sm:$0xff] %v458_v6 }
  0x5e   : > { %467 = vst [vmem:[#allocation2 + $0x38] sm:$0xff] %v459_v8 }
  0x5f   : > { %v474_v9 = vld [vmem:[#allocation2 + $0x18] sm:$0xff]  ;;  %v472_v10 = vld [vmem:[#allocation2 + $0x30] sm:$0xff]  ;;  %v473_v13 = vld [vmem:[#allocation2] sm:$0xff]  ;;  %vm496_vm0 = vcmask 7168  }
  0x60   : > { %v476_v11 = vld [vmem:[#allocation2 + $0x8] sm:$0xff]  ;;  %484 = vadd.xlane.f32.xlu1 %v474_v9  ;;  %480 = vadd.xlane.f32.xlu0 %v472_v10  ;;  %v475_v12 = vld [vmem:[#allocation2 + $0x10] sm:$0xff] }
  0x61   : > { %488 = vadd.xlane.f32.xlu2 %v476_v11  ;;  %v477_v14 = vld [vmem:[#allocation2 + $0x20] sm:$0xff] }
  0x64   : > { %v478_v16 = vld [vmem:[#allocation2 + $0x28] sm:$0xff] }
  0x65   : > { %v479_v15 = vld [vmem:[#allocation2 + $0x38] sm:$0xff] }
  0x68   : > { %486 = vadd.xlane.f32.xlu1 %v475_v12  ;;  %482 = vadd.xlane.f32.xlu0 %v473_v13 }
  0x69   : > { %490 = vadd.xlane.f32.xlu2 %v477_v14 }
  0x70   : > { %494 = vadd.xlane.f32.xlu1 %v479_v15  ;;  %492 = vadd.xlane.f32.xlu0 %v478_v16 }
  0xd3   : > { %v485_v17 = vpop.xlane.xlu1 %484  ;;  %v481_v18 = vpop.xlane.xlu0 %480 }
  0xd4   : > { %499 = vst.msk [vmem:[%s1165_s14 + $0x10] sm:$0xff] %vm496_vm0, %v485_v17  ;;  %v489_v19 = vpop.xlane.xlu2 %488 }
  0xd5   : > { %497 = vst.msk [vmem:[%s1165_s14] sm:$0xff] %vm496_vm0, %v481_v18 }
  0xd6   : > { %501 = vst.msk [vmem:[%s1165_s14 + $0x20] sm:$0xff] %vm496_vm0, %v489_v19 }
  0xdb   : > { %v487_v20 = vpop.xlane.xlu1 %486  ;;  %v483_v21 = vpop.xlane.xlu0 %482 }
  0xdc   : > { %500 = vst.msk [vmem:[%s1165_s14 + $0x18] sm:$0xff] %vm496_vm0, %v487_v20  ;;  %v491_v22 = vpop.xlane.xlu2 %490 }
  0xdd   : > { %498 = vst.msk [vmem:[%s1165_s14 + $0x8] sm:$0xff] %vm496_vm0, %v483_v21 }
  0xde   : > { %502 = vst.msk [vmem:[%s1165_s14 + $0x28] sm:$0xff] %vm496_vm0, %v491_v22 }
  0xe3   : > { %v495_v23 = vpop.xlane.xlu1 %494  ;;  %v493_v24 = vpop.xlane.xlu0 %492 }
  0xe4   : > { %504 = vst.msk [vmem:[%s1165_s14 + $0x38] sm:$0xff] %vm496_vm0, %v495_v23 }
  0xe5   : > { %503 = vst.msk [vmem:[%s1165_s14 + $0x30] sm:$0xff] %vm496_vm0, %v493_v24 }
  0xe6 PF: > { %s23_s22 = sadd.s32 1, %s977_s22   ;;  %s1264_s18 = sld [smem:[#allocation17_spill]] }
  0xe7   : > { %p20_p3 = scmp.ge.s32.totalorder %s23_s22, 14   ;;  %s1265_s19 = sld [smem:[#allocation13_spill]] }
  0xe8   : > { %s1266_s28 = sld [smem:[#allocation14_spill]]  ;;  %s1269_s15 = smov %s953_s16 }
  0xe9   : > { %s1267_s20 = sld [smem:[#allocation15_spill]]  ;;  %s1270_s16 = smov %s957_s17 }
  0xea   : > { %s1268_s21 = sld [smem:[#allocation16_spill]]  ;;  %22 = sbr.rel (!%p20_p3) target bundleno = 12 (0xc), region = 121 }
  0xec   : > { %s1271_s17 = smov %s1264_s18 }
  0xed   : > { %s1272_s18 = smov %s1265_s19 }
  0xee   : > { %s1273_s19 = smov %s1266_s28 }
  0xef   :  { %527 = vsyncpa [#allocation4], 1 }
  0xf0   :  { %529 = vsyncpa [#allocation4 + $0x1], 1 }
  0xf1   :  { %530 = vsyncpa [#allocation6], 1 }
  0xf2   :  { %532 = vsyncpa [#allocation6 + $0x1], 1 }
  0xf3   :  { %533 = vsyncpa [#allocation9], 1 }
  0xf4   :  { %535 = vsyncpa [#allocation9 + $0x1], 1 }

</bundles_post_ra>
